<compile_context>
chip_gen: v6e
topology: v6e:2x2x1
jax: 0.10.0
libtpu: 0.0.40
codegen_flags: <defaults>
</compile_context>

<pallas_src>
import functools

import jax
import jax.numpy as jnp
from jax import lax
from jax.experimental import pallas as pl
from jax.experimental.pallas import tpu as pltpu


def _cdefunc_kernel(z_ref, w_ref, b_ref, o_ref):
    # z_ref : (tm, H)    VMEM   (row tile of the batch)
    # w_ref : (HC, H)    VMEM   (native nn.Linear layout, resident across grid)
    # b_ref : (1, HC)    VMEM   (resident across grid)
    # o_ref : (tm, HC)   VMEM
    #
    # out = z @ W^T  expressed as a contraction over the shared H axis, so the
    # MXU consumes the (HC, H) weight directly -- no transpose anywhere.
    acc = lax.dot_general(
        z_ref[...],
        w_ref[...],
        dimension_numbers=(((1,), (1,)), ((), ())),
        preferred_element_type=jnp.float32,
    )
    o_ref[...] = (acc + b_ref[...]).astype(o_ref.dtype)


@functools.partial(jax.jit, static_argnames=("input_channels",))
def cdefunc_forward(t, z, weight, bias, input_channels):
    """Pallas implementation of CDEFunc.forward.

    Args:
      t: unused scalar time (kept for API parity with the PyTorch module).
      z: (B, H) float32.
      weight: (H*C, H) float32 -- PyTorch nn.Linear weight (out_features, in_features).
      bias:   (H*C,)   float32.
      input_channels: C (static).
    Returns:
      (B, H, C) float32.
    """
    del t  # CDEFunc ignores t
    B, H = z.shape
    HC, H_in = weight.shape
    assert HC == H * input_channels and H_in == H

    # ---- batch tiling -------------------------------------------------------
    # Small batches: single full-row block (block dim == full array dim is
    # always layout-legal). Large batches: 256-row tiles (MXU-friendly M on
    # v6e/v7x), padding B up so every block is full.
    if B <= 256:
        tm = B
        Bp = B
        z_in = z
    else:
        tm = 256
        Bp = pl.cdiv(B, tm) * tm
        z_in = jnp.pad(z, ((0, Bp - B), (0, 0)))

    b2 = bias.reshape(1, HC)  # (1, HC) — lane-dense bias row

    # ---- VMEM budget (weight + bias resident, z/out double-buffered) -------
    bytes_f32 = 4
    resident = (HC * H + HC) * bytes_f32
    per_tile = (tm * H + tm * HC) * bytes_f32
    vmem_limit = min(128 << 20, max(32 << 20, int(1.5 * (resident + 4 * per_tile))))

    # ---- advisory cost for XLA's scheduler ----------------------------------
    cost = pl.CostEstimate(
        flops=2 * B * H * HC,
        transcendentals=0,
        bytes_accessed=(B * H + HC * H + HC + B * HC) * bytes_f32,
    )

    out = pl.pallas_call(
        _cdefunc_kernel,
        out_shape=jax.ShapeDtypeStruct((Bp, HC), z.dtype),
        grid_spec=pltpu.PrefetchScalarGridSpec(
            num_scalar_prefetch=0,
            grid=(Bp // tm,),
            in_specs=[
                pl.BlockSpec((tm, H), lambda i: (i, 0)),     # z: row-tiled
                pl.BlockSpec((HC, H), lambda i: (0, 0)),     # weight: resident
                pl.BlockSpec((1, HC), lambda i: (0, 0)),     # bias: resident
            ],
            out_specs=pl.BlockSpec((tm, HC), lambda i: (i, 0)),
        ),
        compiler_params=pltpu.CompilerParams(
            dimension_semantics=("parallel",),
            vmem_limit_bytes=vmem_limit,
        ),
        cost_estimate=cost,
    )(z_in, weight, b2)

    out = out[:B]  # drop row padding (no-op when B <= 256)
    # view(z.size(0), z.size(1), -1)  ->  (B, H, C)
    return out.reshape(B, H, input_channels)


if __name__ == "__main__":
    # Small, forward-implied shapes.
    batch = 8
    hidden_dim = 32
    input_channels = 4

    key = jax.random.PRNGKey(0)
    kz, kw, kb = jax.random.split(key, 3)

    # Deterministic synthetic parameters (same shapes as nn.Linear(H, H*C)).
    bound = 1.0 / jnp.sqrt(jnp.float32(hidden_dim))
    weight = jax.random.uniform(
        kw, (hidden_dim * input_channels, hidden_dim),
        minval=-bound, maxval=bound, dtype=jnp.float32)
    bias = jax.random.uniform(
        kb, (hidden_dim * input_channels,),
        minval=-bound, maxval=bound, dtype=jnp.float32)

    z = jax.random.normal(kz, (batch, hidden_dim), dtype=jnp.float32)
    t = jnp.float32(0.0)

    out = cdefunc_forward(t, z, weight, bias, input_channels)
    out = jax.block_until_ready(out)

    # Reference check in plain JAX.
    ref = (z @ weight.T + bias).reshape(batch, hidden_dim, input_channels)
    assert out.shape == (batch, hidden_dim, input_channels)
    assert jnp.allclose(out, ref, atol=1e-5, rtol=1e-5)

    print("KERNEL_OK")
</pallas_src>

<mosaic_0001>
module attributes {stable_mosaic.version = 11 : i64} {
  func.func @_cdefunc_kernel(%arg0: i32, %arg1: memref<8x32xf32, #tpu.memory_space<vmem>>, %arg2: memref<128x32xf32, #tpu.memory_space<vmem>>, %arg3: memref<1x128xf32, #tpu.memory_space<vmem>>, %arg4: memref<8x128xf32, #tpu.memory_space<vmem>>) attributes {dimension_semantics = [#tpu.dimension_semantics<parallel>], iteration_bounds = array<i64: 1>, scalar_prefetch = 0 : i64, scratch_operands = 0 : i64, tpu.core_type = #tpu.core_type<tc>, window_params = [{transform_indices = @transform_0, window_bounds = array<i64: 8, 32>}, {pipeline_mode = #tpu.pipeline_mode<synchronous>, transform_indices = @transform_1, window_bounds = array<i64: 128, 32>}, {pipeline_mode = #tpu.pipeline_mode<synchronous>, transform_indices = @transform_2, window_bounds = array<i64: 1, 128>}, {transform_indices = @transform_3, window_bounds = array<i64: 8, 128>}]} {
    %c0 = arith.constant 0 : index
    %c0_0 = arith.constant 0 : index
    %0 = vector.load %arg1[%c0, %c0_0] : memref<8x32xf32, #tpu.memory_space<vmem>>, vector<8x32xf32>
    %c0_1 = arith.constant 0 : index
    %c0_2 = arith.constant 0 : index
    %1 = vector.load %arg2[%c0_1, %c0_2] : memref<128x32xf32, #tpu.memory_space<vmem>>, vector<128x32xf32>
    %cst = arith.constant dense<0.000000e+00> : vector<8x128xf32>
    %2 = tpu.matmul %0, %1, %cst {dimension_numbers = #tpu.dot_dimension_numbers<[1], [1], [0], [0], [0, 0, 1, 0], [], []>} : vector<8x32xf32>, vector<128x32xf32>, vector<8x128xf32> -> vector<8x128xf32>
    %c0_3 = arith.constant 0 : index
    %c0_4 = arith.constant 0 : index
    %3 = vector.load %arg3[%c0_3, %c0_4] : memref<1x128xf32, #tpu.memory_space<vmem>>, vector<1x128xf32>
    %4 = vector.broadcast %3 : vector<1x128xf32> to vector<8x128xf32>
    %5 = arith.addf %2, %4 : vector<8x128xf32>
    %c0_5 = arith.constant 0 : index
    %c0_6 = arith.constant 0 : index
    %6 = vector.load %arg4[%c0_5, %c0_6] : memref<8x128xf32, #tpu.memory_space<vmem>>, vector<8x128xf32>
    tpu.vector_store %arg4[%c0_5, %c0_6], %5 {strides = array<i32>} : memref<8x128xf32, #tpu.memory_space<vmem>>, vector<8x128xf32>,
    return
  }
  func.func @transform_0(%arg0: i32) -> (i32, i32) {
    %c0_i32 = arith.constant 0 : i32
    %c0_i32_0 = arith.constant 0 : i32
    return %arg0, %c0_i32 : i32, i32
  }
  func.func @transform_1(%arg0: i32) -> (i32, i32) {
    %c0_i32 = arith.constant 0 : i32
    %c0_i32_0 = arith.constant 0 : i32
    %c0_i32_1 = arith.constant 0 : i32
    return %c0_i32, %c0_i32_0 : i32, i32
  }
  func.func @transform_2(%arg0: i32) -> (i32, i32) {
    %c0_i32 = arith.constant 0 : i32
    %c0_i32_0 = arith.constant 0 : i32
    %c0_i32_1 = arith.constant 0 : i32
    return %c0_i32, %c0_i32_0 : i32, i32
  }
  func.func @transform_3(%arg0: i32) -> (i32, i32) {
    %c0_i32 = arith.constant 0 : i32
    %c0_i32_0 = arith.constant 0 : i32
    return %arg0, %c0_i32 : i32, i32
  }
}

</mosaic_0001>

<bundles_post_ra>
// kernel: cdefunc_forward.1
= control target key start
LH: loop header
LB: loop body
LE: loop exit
PB: predicated region body
PF: predicated region fallthrough
CT: control target
= control target key end

     0   :  { %vm38_vm0 = vcmask 261120   ;;  %v237_v0 = vmov 0.0   ;;  %vm238_vm1 = vmmov 0   ;;  %s333_s1 = inlined_call_operand.vmem [shape: f32[128,32], index: 1, kind: input, shape index: {}]   ;;  %s334_s0 = inlined_call_operand.vmem [shape: f32[8,32], index: 0, kind: input, shape index: {}]   ;;  %s335_s2 = inlined_call_operand.vmem [shape: f32[1,128], index: 2, kind: input, shape index: {}]   ;;  %s336_s3 = inlined_call_operand.vmem [shape: f32[8,128], index: 3, kind: output, shape index: {}]  }
   0x1   :  { %200 = vmatprep.subr.mxu0 %v237_v0  ;;  %v30_v1 = vld [vmem:[%s333_s1 + $0x78] sm:$0xff]  ;;  %232 = vmatprep.mubr.msk.f32.mxu0 %vm238_vm1, %v237_v0  ;;  %v29_v2 = vld [vmem:[%s333_s1 + $0x70] sm:$0xff]  ;;  %v28_v3 = vld [vmem:[%s333_s1 + $0x68] sm:$0xff] }
   0x2   :  { %201 = vmatpush3.xpose.msk.msra.mxu0 %vm38_vm0, %v30_v1  ;;  %v27_v4 = vld [vmem:[%s333_s1 + $0x60] sm:$0xff]  ;;  %v26_v5 = vld [vmem:[%s333_s1 + $0x58] sm:$0xff]  ;;  %v25_v6 = vld [vmem:[%s333_s1 + $0x50] sm:$0xff] }
   0x3   :  { %202 = vmatprep.subr.mxu0 %v237_v0  ;;  %v24_v7 = vld [vmem:[%s333_s1 + $0x48] sm:$0xff]  ;;  %v23_v8 = vld [vmem:[%s333_s1 + $0x40] sm:$0xff]  ;;  %v22_v9 = vld [vmem:[%s333_s1 + $0x38] sm:$0xff] }
   0x4   :  { %v21_v10 = vld [vmem:[%s333_s1 + $0x30] sm:$0xff]  ;;  %v20_v11 = vld [vmem:[%s333_s1 + $0x28] sm:$0xff]  ;;  %v19_v12 = vld [vmem:[%s333_s1 + $0x20] sm:$0xff] }
   0x5   :  { %v18_v13 = vld [vmem:[%s333_s1 + $0x18] sm:$0xff]  ;;  %v17_v14 = vld [vmem:[%s333_s1 + $0x10] sm:$0xff]  ;;  %v16_v15 = vld [vmem:[%s333_s1 + $0x8] sm:$0xff] }
   0x6   :  { %203 = vmatpush3.xpose.msk.msra.mxu0 %vm38_vm0, %v29_v2  ;;  %v15_v16 = vld [vmem:[%s333_s1] sm:$0xff] }
   0x7   :  { %204 = vmatprep.subr.mxu0 %v237_v0  ;;  %v14_v17 = vld [vmem:[%s334_s0] sm:$0xff] }
   0x8   :  { %v165_v18 = vld [vmem:[%s335_s2] ss:$0 sm:$0xff] }
   0xa   :  { %205 = vmatpush3.xpose.msk.msra.mxu0 %vm38_vm0, %v28_v3 }
   0xb   :  { %206 = vmatprep.subr.mxu0 %v237_v0 }
   0xe   :  { %207 = vmatpush3.xpose.msk.msra.mxu0 %vm38_vm0, %v27_v4 }
   0xf   :  { %208 = vmatprep.subr.mxu0 %v237_v0 }
  0x12   :  { %209 = vmatpush3.xpose.msk.msra.mxu0 %vm38_vm0, %v26_v5 }
  0x13   :  { %210 = vmatprep.subr.mxu0 %v237_v0 }
  0x16   :  { %211 = vmatpush3.xpose.msk.msra.mxu0 %vm38_vm0, %v25_v6 }
  0x17   :  { %212 = vmatprep.subr.mxu0 %v237_v0 }
  0x1a   :  { %213 = vmatpush3.xpose.msk.msra.mxu0 %vm38_vm0, %v24_v7 }
  0x1b   :  { %214 = vmatprep.subr.mxu0 %v237_v0 }
  0x1e   :  { %215 = vmatpush3.xpose.msk.msra.mxu0 %vm38_vm0, %v23_v8 }
  0x1f   :  { %216 = vmatprep.subr.mxu0 %v237_v0 }
  0x22   :  { %217 = vmatpush3.xpose.msk.msra.mxu0 %vm38_vm0, %v22_v9 }
  0x23   :  { %218 = vmatprep.subr.mxu0 %v237_v0 }
  0x26   :  { %219 = vmatpush3.xpose.msk.msra.mxu0 %vm38_vm0, %v21_v10 }
  0x27   :  { %220 = vmatprep.subr.mxu0 %v237_v0 }
  0x2a   :  { %221 = vmatpush3.xpose.msk.msra.mxu0 %vm38_vm0, %v20_v11 }
  0x2b   :  { %222 = vmatprep.subr.mxu0 %v237_v0 }
  0x2e   :  { %223 = vmatpush3.xpose.msk.msra.mxu0 %vm38_vm0, %v19_v12 }
  0x2f   :  { %224 = vmatprep.subr.mxu0 %v237_v0 }
  0x32   :  { %225 = vmatpush3.xpose.msk.msra.mxu0 %vm38_vm0, %v18_v13 }
  0x33   :  { %226 = vmatprep.subr.mxu0 %v237_v0 }
  0x36   :  { %227 = vmatpush3.xpose.msk.msra.mxu0 %vm38_vm0, %v17_v14 }
  0x37   :  { %228 = vmatprep.subr.mxu0 %v237_v0 }
  0x3a   :  { %229 = vmatpush3.xpose.msk.msra.mxu0 %vm38_vm0, %v16_v15 }
  0x3b   :  { %230 = vmatprep.subr.mxu0 %v237_v0 }
  0x3e   :  { %231 = vmatpush3.xpose.msk.msra.mxu0 %vm38_vm0, %v15_v16 }
  0x41   :  { %233 = vmatmul.mubr.msk.f32.vlgmr.msra.gmra.mxu0 %vm38_vm0, %v14_v17 }
 0x101   :  { %v156_v19 = vpop.f32.mrf.mxu0 }
 0x102   :  { %v157_v20 = vadd.f32 %v165_v18, %v156_v19 }
 0x103   :  { %v234_v21 = vpop.f32.mrf.mxu0 }
 0x104   :  { %160 = vst [vmem:[%s336_s3] sm:$0xff] %v157_v20 }

</bundles_post_ra>
